<compile_context>
chip_gen: v6e
topology: v6e:2x2x1
jax: 0.10.0
libtpu: 0.0.40
codegen_flags: <defaults>
</compile_context>

<pallas_src>
import functools

import jax
import jax.numpy as jnp
import numpy as np
from jax.experimental import pallas as pl
from jax.experimental.pallas import tpu as pltpu


def _round_up(x, mult):
    return ((x + mult - 1) // mult) * mult


def _pad2(a, rows, cols):
    a = jnp.asarray(a, jnp.float32)
    r, c = a.shape
    return jnp.pad(a, ((0, rows - r), (0, cols - c)))


def cross_attention_kernel(q_in_ref, wq_ref, bq_ref,
                           k_in_ref, wk_ref, bk_ref,
                           v_in_ref, wv_ref, bv_ref,
                           ctx_ref, attn_ref,
                           q_scratch,
                           *, n, m, tm):
    """One key/value tile of size `tm` per grid step.

    q_in_ref : (n_pad, h_pad)   queries, resident
    wq/wk/wv : (h_pad, h_pad)   pre-transposed (in, out) weights; scale folded into wq
    bq/bk/bv : (1, h_pad)       bias rows; scale folded into bq
    k_in_ref : (tm, h_pad)      current key tile
    v_in_ref : (tm, h_pad)      current value tile
    ctx_ref  : (n_pad, h_pad)   context output, accumulated across the M grid axis
    attn_ref : (n_pad, tm)      attention-weights tile output
    q_scratch: (n_pad, h_pad)   projected queries, computed once at step 0
    """
    j = pl.program_id(0)
    n_pad, h_pad = ctx_ref.shape

    # --- once: project queries (rsqrt(H) pre-folded into wq/bq) and init ctx ---
    @pl.when(j == 0)
    def _():
        q_scratch[...] = (jnp.dot(q_in_ref[...], wq_ref[...],
                                  preferred_element_type=jnp.float32)
                          + bq_ref[...])
        ctx_ref[...] = jnp.zeros_like(ctx_ref)

    # --- per-tile key / value projections (separate dots, no fused 3x waste) ---
    k = (jnp.dot(k_in_ref[...], wk_ref[...],
                 preferred_element_type=jnp.float32) + bk_ref[...])
    v = (jnp.dot(v_in_ref[...], wv_ref[...],
                 preferred_element_type=jnp.float32) + bv_ref[...])

    # Padded value rows picked up the broadcast bias bv; zero them so padded
    # attention columns contribute nothing to the context accumulation.
    v_rows = jax.lax.broadcasted_iota(jnp.int32, (tm, 1), 0) + j * tm
    v = jnp.where(v_rows < m, v, 0.0)

    # scores = q @ k.T (scale already folded into q) without materializing a
    # transpose: contract the last axis of both operands (MXU-native A.B^T).
    scores = jax.lax.dot_general(
        q_scratch[...], k,
        dimension_numbers=(((1,), (1,)), ((), ())),
        preferred_element_type=jnp.float32)                 # (n_pad, tm)

    # If the query axis were padded, mask it out (softmax normalizes over N).
    if n_pad > n:
        q_rows = jax.lax.broadcasted_iota(jnp.int32, (n_pad, 1), 0)
        scores = jnp.where(q_rows < n, scores, -1e30)

    # torch Softmax(dim=1) on a (1, N, M) tensor -> normalize over the N axis.
    # Each key column is independent, so M-tiles need no online softmax.
    col_max = jnp.max(scores, axis=0, keepdims=True)
    e = jnp.exp(scores - col_max)
    denom = jnp.sum(e, axis=0, keepdims=True)               # (1, tm), > 0
    attn = e * pl.reciprocal(denom, approx=False)           # exact recip + mul

    attn_ref[...] = attn.astype(attn_ref.dtype)
    ctx_ref[...] += jnp.dot(attn, v, preferred_element_type=jnp.float32)


def pack_cross_attention_params(wq, bq, wk, bk, wv, bv):
    """One-time (per model) packing: transpose to (in, out), pad to lane-dense
    128 multiples, and fold the rsqrt(hidden) scale into Wq / bq."""
    h = wq.shape[0]
    h_pad = _round_up(h, 128)
    scale = jax.lax.rsqrt(jnp.float32(h))   # torch.rsqrt(tensor(hidden, float))
    return (
        _pad2(wq.T * scale, h_pad, h_pad),
        _pad2((bq * scale).reshape(1, h), 1, h_pad),
        _pad2(wk.T, h_pad, h_pad),
        _pad2(bk.reshape(1, h), 1, h_pad),
        _pad2(wv.T, h_pad, h_pad),
        _pad2(bv.reshape(1, h), 1, h_pad),
    )


@jax.jit
def cross_attention(queries, keys, values, packed_params):
    n, h = queries.shape
    m = keys.shape[0]
    wq_p, bq_p, wk_p, bk_p, wv_p, bv_p = packed_params
    h_pad = wq_p.shape[0]

    n_pad = _round_up(n, 8)                 # sublane alignment for the query axis
    m_pad128 = _round_up(m, 128)
    # Key/value tile: 512 lanes when it divides evenly (v5e/v6e sweet spot),
    # otherwise 256 / 128 to avoid over-padding.  Always a multiple of 128.
    if m_pad128 % 512 == 0:
        tm = 512
    elif m_pad128 % 256 == 0:
        tm = 256
    else:
        tm = 128
    m_pad = _round_up(m, tm)
    grid = (m_pad // tm,)

    q_p = _pad2(queries, n_pad, h_pad)
    k_p = _pad2(keys, m_pad, h_pad)
    v_p = _pad2(values, m_pad, h_pad)

    kernel = functools.partial(cross_attention_kernel, n=n, m=m, tm=tm)

    resident = lambda shape: pl.BlockSpec(shape, lambda j: (0, 0))
    tiled_kv = pl.BlockSpec((tm, h_pad), lambda j: (j, 0))

    # Size scoped VMEM to the actual resident set (x2 for double buffering of
    # pipelined tiles) — default scoped limit is only 16/32 MiB.
    vmem_bytes = 4 * (
        2 * n_pad * h_pad                       # queries
        + 2 * 3 * (h_pad * h_pad + h_pad)       # weights + biases
        + 2 * 2 * tm * h_pad                    # key + value tiles (double-buffered)
        + 2 * n_pad * h_pad                     # ctx accumulator
        + 2 * n_pad * tm                        # attn tile (double-buffered)
        + n_pad * h_pad                         # q scratch
    )
    vmem_limit = int(min(max(2 * vmem_bytes, 32 * 1024 * 1024), 64 * 1024 * 1024))

    ctx_p, attn_p = pl.pallas_call(
        kernel,
        grid=grid,
        out_shape=(jax.ShapeDtypeStruct((n_pad, h_pad), jnp.float32),
                   jax.ShapeDtypeStruct((n_pad, m_pad), jnp.float32)),
        in_specs=[
            resident((n_pad, h_pad)),           # queries
            resident((h_pad, h_pad)),           # Wq^T (scaled)
            resident((1, h_pad)),               # bq (scaled)
            tiled_kv,                           # keys tile
            resident((h_pad, h_pad)),           # Wk^T
            resident((1, h_pad)),               # bk
            tiled_kv,                           # values tile
            resident((h_pad, h_pad)),           # Wv^T
            resident((1, h_pad)),               # bv
        ],
        out_specs=(
            pl.BlockSpec((n_pad, h_pad), lambda j: (0, 0)),   # ctx: accumulator
            pl.BlockSpec((n_pad, tm), lambda j: (0, j)),      # attn: per-tile
        ),
        scratch_shapes=[pltpu.VMEM((n_pad, h_pad), jnp.float32)],
        compiler_params=pltpu.CompilerParams(
            dimension_semantics=("arbitrary",),   # ctx accumulates across M tiles
            vmem_limit_bytes=vmem_limit),
    )(q_p, wq_p, bq_p, k_p, wk_p, bk_p, v_p, wv_p, bv_p)

    # Strip padding and re-add the unsqueeze(0) batch dim exactly as torch returns.
    ctx = ctx_p[:n, :h][None, :, :]
    attn = attn_p[:n, :m][None, :, :]
    return ctx, attn


def _reference(queries, keys, values, wq, bq, wk, bk, wv, bv):
    """Plain-JAX reference matching the PyTorch forward."""
    h = queries.shape[-1]
    with jax.default_matmul_precision("highest"):
        scale = jax.lax.rsqrt(jnp.float32(h))
        q = queries @ wq.T + bq
        k = keys @ wk.T + bk
        v = values @ wv.T + bv
        scores = scale * (q @ k.T)                        # (N, M)
        e = jnp.exp(scores - jnp.max(scores, axis=0, keepdims=True))
        attn = e / jnp.sum(e, axis=0, keepdims=True)      # softmax over N (torch dim=1)
        ctx = attn @ v
    return ctx[None], attn[None]


if __name__ == "__main__":
    hidden_size = 32

    key = jax.random.PRNGKey(0)
    ks = jax.random.split(key, 12)

    # Deterministic synthetic parameters for the three nn.Linear(hidden, hidden) layers.
    init_scale = 1.0 / np.sqrt(hidden_size)
    wq = jax.random.uniform(ks[3], (hidden_size, hidden_size), jnp.float32, -init_scale, init_scale)
    wk = jax.random.uniform(ks[4], (hidden_size, hidden_size), jnp.float32, -init_scale, init_scale)
    wv = jax.random.uniform(ks[5], (hidden_size, hidden_size), jnp.float32, -init_scale, init_scale)
    bq = jax.random.uniform(ks[6], (hidden_size,), jnp.float32, -init_scale, init_scale)
    bk = jax.random.uniform(ks[7], (hidden_size,), jnp.float32, -init_scale, init_scale)
    bv = jax.random.uniform(ks[8], (hidden_size,), jnp.float32, -init_scale, init_scale)

    packed = pack_cross_attention_params(wq, bq, wk, bk, wv, bv)

    # --- small case (single M tile) ---
    N, M = 8, 16
    queries = jax.random.normal(ks[0], (N, hidden_size), dtype=jnp.float32)
    keys_in = jax.random.normal(ks[1], (M, hidden_size), dtype=jnp.float32)
    values = jax.random.normal(ks[2], (M, hidden_size), dtype=jnp.float32)

    ctx, attn = cross_attention(queries, keys_in, values, packed)
    jax.block_until_ready((ctx, attn))

    ctx_ref, attn_ref = _reference(queries, keys_in, values, wq, bq, wk, bk, wv, bv)
    np.testing.assert_allclose(np.asarray(ctx), np.asarray(ctx_ref), rtol=1e-4, atol=1e-4)
    np.testing.assert_allclose(np.asarray(attn), np.asarray(attn_ref), rtol=1e-4, atol=1e-4)
    assert ctx.shape == (1, N, hidden_size) and attn.shape == (1, N, M)

    # --- larger case: exercises multiple M tiles, accumulation and M padding ---
    N2, M2 = 40, 300
    queries2 = jax.random.normal(ks[9], (N2, hidden_size), dtype=jnp.float32)
    keys2 = jax.random.normal(ks[10], (M2, hidden_size), dtype=jnp.float32)
    values2 = jax.random.normal(ks[11], (M2, hidden_size), dtype=jnp.float32)

    ctx2, attn2 = cross_attention(queries2, keys2, values2, packed)
    jax.block_until_ready((ctx2, attn2))

    ctx2_ref, attn2_ref = _reference(queries2, keys2, values2, wq, bq, wk, bk, wv, bv)
    np.testing.assert_allclose(np.asarray(ctx2), np.asarray(ctx2_ref), rtol=1e-4, atol=1e-4)
    np.testing.assert_allclose(np.asarray(attn2), np.asarray(attn2_ref), rtol=1e-4, atol=1e-4)
    assert ctx2.shape == (1, N2, hidden_size) and attn2.shape == (1, N2, M2)

    print("KERNEL_OK")
</pallas_src>

<mosaic_0001>
module attributes {stable_mosaic.version = 11 : i64} {
  func.func @cross_attention_kernel(%arg0: i32, %arg1: memref<8x128xf32, #tpu.memory_space<vmem>>, %arg2: memref<128x128xf32, #tpu.memory_space<vmem>>, %arg3: memref<1x128xf32, #tpu.memory_space<vmem>>, %arg4: memref<128x128xf32, #tpu.memory_space<vmem>>, %arg5: memref<128x128xf32, #tpu.memory_space<vmem>>, %arg6: memref<1x128xf32, #tpu.memory_space<vmem>>, %arg7: memref<128x128xf32, #tpu.memory_space<vmem>>, %arg8: memref<128x128xf32, #tpu.memory_space<vmem>>, %arg9: memref<1x128xf32, #tpu.memory_space<vmem>>, %arg10: memref<8x128xf32, #tpu.memory_space<vmem>>, %arg11: memref<8x128xf32, #tpu.memory_space<vmem>>, %arg12: memref<8x128xf32, #tpu.memory_space<vmem>>) attributes {dimension_semantics = [#tpu.dimension_semantics<arbitrary>], iteration_bounds = array<i64: 1>, scalar_prefetch = 0 : i64, scratch_operands = 1 : i64, tpu.core_type = #tpu.core_type<tc>, window_params = [{pipeline_mode = #tpu.pipeline_mode<synchronous>, transform_indices = @transform_0, window_bounds = array<i64: 8, 128>}, {pipeline_mode = #tpu.pipeline_mode<synchronous>, transform_indices = @transform_1, window_bounds = array<i64: 128, 128>}, {pipeline_mode = #tpu.pipeline_mode<synchronous>, transform_indices = @transform_2, window_bounds = array<i64: 1, 128>}, {transform_indices = @transform_3, window_bounds = array<i64: 128, 128>}, {pipeline_mode = #tpu.pipeline_mode<synchronous>, transform_indices = @transform_4, window_bounds = array<i64: 128, 128>}, {pipeline_mode = #tpu.pipeline_mode<synchronous>, transform_indices = @transform_5, window_bounds = array<i64: 1, 128>}, {transform_indices = @transform_6, window_bounds = array<i64: 128, 128>}, {pipeline_mode = #tpu.pipeline_mode<synchronous>, transform_indices = @transform_7, window_bounds = array<i64: 128, 128>}, {pipeline_mode = #tpu.pipeline_mode<synchronous>, transform_indices = @transform_8, window_bounds = array<i64: 1, 128>}, {pipeline_mode = #tpu.pipeline_mode<synchronous>, transform_indices = @transform_9, window_bounds = array<i64: 8, 128>}, {transform_indices = @transform_10, window_bounds = array<i64: 8, 128>}]} {
    %c0_i32 = arith.constant 0 : i32
    %0 = arith.cmpi eq, %arg0, %c0_i32 : i32
    %1 = arith.extui %0 : i1 to i32
    %c0_i32_0 = arith.constant 0 : i32
    %2 = arith.cmpi ne, %1, %c0_i32_0 : i32
    scf.if %2 {
      %c0_26 = arith.constant 0 : index
      %c0_27 = arith.constant 0 : index
      %42 = vector.load %arg1[%c0_26, %c0_27] : memref<8x128xf32, #tpu.memory_space<vmem>>, vector<8x128xf32>
      %c0_28 = arith.constant 0 : index
      %c0_29 = arith.constant 0 : index
      %43 = vector.load %arg2[%c0_28, %c0_29] : memref<128x128xf32, #tpu.memory_space<vmem>>, vector<128x128xf32>
      %cst_30 = arith.constant dense<0.000000e+00> : vector<8x128xf32>
      %44 = tpu.matmul %42, %43, %cst_30 {dimension_numbers = #tpu.dot_dimension_numbers<[1], [0], [0], [1], [0, 0, 1, 1], [], []>} : vector<8x128xf32>, vector<128x128xf32>, vector<8x128xf32> -> vector<8x128xf32>
      %c0_31 = arith.constant 0 : index
      %c0_32 = arith.constant 0 : index
      %45 = vector.load %arg3[%c0_31, %c0_32] : memref<1x128xf32, #tpu.memory_space<vmem>>, vector<1x128xf32>
      %46 = vector.broadcast %45 : vector<1x128xf32> to vector<8x128xf32>
      %47 = arith.addf %44, %46 : vector<8x128xf32>
      %c0_33 = arith.constant 0 : index
      %c0_34 = arith.constant 0 : index
      %48 = vector.load %arg12[%c0_33, %c0_34] : memref<8x128xf32, #tpu.memory_space<vmem>>, vector<8x128xf32>
      tpu.vector_store %arg12[%c0_33, %c0_34], %47 {strides = array<i32>} : memref<8x128xf32, #tpu.memory_space<vmem>>, vector<8x128xf32>,
      %cst_35 = arith.constant 0.000000e+00 : f32
      %49 = vector.broadcast %cst_35 : f32 to vector<8x128xf32>
      %c0_36 = arith.constant 0 : index
      %c0_37 = arith.constant 0 : index
      %50 = vector.load %arg10[%c0_36, %c0_37] : memref<8x128xf32, #tpu.memory_space<vmem>>, vector<8x128xf32>
      tpu.vector_store %arg10[%c0_36, %c0_37], %49 {strides = array<i32>} : memref<8x128xf32, #tpu.memory_space<vmem>>, vector<8x128xf32>,
    } else {
    }
    %c0 = arith.constant 0 : index
    %c0_1 = arith.constant 0 : index
    %3 = vector.load %arg4[%c0, %c0_1] : memref<128x128xf32, #tpu.memory_space<vmem>>, vector<128x128xf32>
    %c0_2 = arith.constant 0 : index
    %c0_3 = arith.constant 0 : index
    %4 = vector.load %arg5[%c0_2, %c0_3] : memref<128x128xf32, #tpu.memory_space<vmem>>, vector<128x128xf32>
    %cst = arith.constant dense<0.000000e+00> : vector<128x128xf32>
    %5 = tpu.matmul %3, %4, %cst {dimension_numbers = #tpu.dot_dimension_numbers<[1], [0], [0], [1], [0, 0, 1, 1], [], []>} : vector<128x128xf32>, vector<128x128xf32>, vector<128x128xf32> -> vector<128x128xf32>
    %c0_4 = arith.constant 0 : index
    %c0_5 = arith.constant 0 : index
    %6 = vector.load %arg6[%c0_4, %c0_5] : memref<1x128xf32, #tpu.memory_space<vmem>>, vector<1x128xf32>
    %7 = vector.broadcast %6 : vector<1x128xf32> to vector<128x128xf32>
    %8 = arith.addf %5, %7 : vector<128x128xf32>
    %c0_6 = arith.constant 0 : index
    %c0_7 = arith.constant 0 : index
    %9 = vector.load %arg7[%c0_6, %c0_7] : memref<128x128xf32, #tpu.memory_space<vmem>>, vector<128x128xf32>
    %c0_8 = arith.constant 0 : index
    %c0_9 = arith.constant 0 : index
    %10 = vector.load %arg8[%c0_8, %c0_9] : memref<128x128xf32, #tpu.memory_space<vmem>>, vector<128x128xf32>
    %cst_10 = arith.constant dense<0.000000e+00> : vector<128x128xf32>
    %11 = tpu.matmul %9, %10, %cst_10 {dimension_numbers = #tpu.dot_dimension_numbers<[1], [0], [0], [1], [0, 0, 1, 1], [], []>} : vector<128x128xf32>, vector<128x128xf32>, vector<128x128xf32> -> vector<128x128xf32>
    %c0_11 = arith.constant 0 : index
    %c0_12 = arith.constant 0 : index
    %12 = vector.load %arg9[%c0_11, %c0_12] : memref<1x128xf32, #tpu.memory_space<vmem>>, vector<1x128xf32>
    %13 = vector.broadcast %12 : vector<1x128xf32> to vector<128x128xf32>
    %14 = arith.addf %11, %13 : vector<128x128xf32>
    %15 = tpu.iota {dimensions = array<i32: 0>} : vector<128x1xi32>
    %c128_i32 = arith.constant 128 : i32
    %16 = arith.muli %arg0, %c128_i32 : i32
    %17 = vector.broadcast %16 : i32 to vector<128x1xi32>
    %18 = arith.addi %15, %17 : vector<128x1xi32>
    %c16_i32 = arith.constant 16 : i32
    %19 = vector.broadcast %c16_i32 : i32 to vector<128x1xi32>
    %20 = arith.cmpi slt, %18, %19 : vector<128x1xi32>
    %cst_13 = arith.constant 0.000000e+00 : f32
    %21 = vector.shape_cast %20 : vector<128x1xi1> to vector<128x1xi1>
    %22 = vector.broadcast %21 : vector<128x1xi1> to vector<128x128xi1>
    %23 = vector.broadcast %cst_13 : f32 to vector<128x128xf32>
    %24 = arith.select %22, %14, %23 : vector<128x128xi1>, vector<128x128xf32>
    %c0_14 = arith.constant 0 : index
    %c0_15 = arith.constant 0 : index
    %25 = vector.load %arg12[%c0_14, %c0_15] : memref<8x128xf32, #tpu.memory_space<vmem>>, vector<8x128xf32>
    %cst_16 = arith.constant dense<0.000000e+00> : vector<8x128xf32>
    %26 = tpu.matmul %25, %8, %cst_16 {dimension_numbers = #tpu.dot_dimension_numbers<[1], [1], [0], [0], [0, 0, 1, 0], [], []>} : vector<8x128xf32>, vector<128x128xf32>, vector<8x128xf32> -> vector<8x128xf32>
    %cst_17 = arith.constant dense<0xFF800000> : vector<128xf32>
    %27 = vector.multi_reduction <maximumf>, %26, %cst_17 [0] : vector<8x128xf32> to vector<128xf32>
    %28 = vector.shape_cast %27 : vector<128xf32> to vector<1x128xf32>
    %29 = vector.broadcast %28 : vector<1x128xf32> to vector<8x128xf32>
    %30 = arith.subf %26, %29 : vector<8x128xf32>
    %31 = math.exp %30 : vector<8x128xf32>
    %cst_18 = arith.constant dense<0.000000e+00> : vector<128xf32>
    %32 = vector.multi_reduction <add>, %31, %cst_18 [0] : vector<8x128xf32> to vector<128xf32>
    %33 = vector.shape_cast %32 : vector<128xf32> to vector<1x128xf32>
    %34 = tpu.reciprocal %33 : vector<1x128xf32> -> vector<1x128xf32>
    %35 = vector.broadcast %34 : vector<1x128xf32> to vector<8x128xf32>
    %36 = arith.mulf %31, %35 : vector<8x128xf32>
    %c0_19 = arith.constant 0 : index
    %c0_20 = arith.constant 0 : index
    %37 = vector.load %arg11[%c0_19, %c0_20] : memref<8x128xf32, #tpu.memory_space<vmem>>, vector<8x128xf32>
    tpu.vector_store %arg11[%c0_19, %c0_20], %36 {strides = array<i32>} : memref<8x128xf32, #tpu.memory_space<vmem>>, vector<8x128xf32>,
    %c0_21 = arith.constant 0 : index
    %c0_22 = arith.constant 0 : index
    %38 = vector.load %arg10[%c0_21, %c0_22] : memref<8x128xf32, #tpu.memory_space<vmem>>, vector<8x128xf32>
    %cst_23 = arith.constant dense<0.000000e+00> : vector<8x128xf32>
    %39 = tpu.matmul %36, %24, %cst_23 {dimension_numbers = #tpu.dot_dimension_numbers<[1], [0], [0], [1], [0, 0, 1, 1], [], []>} : vector<8x128xf32>, vector<128x128xf32>, vector<8x128xf32> -> vector<8x128xf32>
    %40 = arith.addf %38, %39 : vector<8x128xf32>
    %c0_24 = arith.constant 0 : index
    %c0_25 = arith.constant 0 : index
    %41 = vector.load %arg10[%c0_24, %c0_25] : memref<8x128xf32, #tpu.memory_space<vmem>>, vector<8x128xf32>
    tpu.vector_store %arg10[%c0_24, %c0_25], %40 {strides = array<i32>} : memref<8x128xf32, #tpu.memory_space<vmem>>, vector<8x128xf32>,
    return
  }
  func.func @transform_0(%arg0: i32) -> (i32, i32) {
    %c0_i32 = arith.constant 0 : i32
    %c0_i32_0 = arith.constant 0 : i32
    %c0_i32_1 = arith.constant 0 : i32
    return %c0_i32, %c0_i32_0 : i32, i32
  }
  func.func @transform_1(%arg0: i32) -> (i32, i32) {
    %c0_i32 = arith.constant 0 : i32
    %c0_i32_0 = arith.constant 0 : i32
    %c0_i32_1 = arith.constant 0 : i32
    return %c0_i32, %c0_i32_0 : i32, i32
  }
  func.func @transform_2(%arg0: i32) -> (i32, i32) {
    %c0_i32 = arith.constant 0 : i32
    %c0_i32_0 = arith.constant 0 : i32
    %c0_i32_1 = arith.constant 0 : i32
    return %c0_i32, %c0_i32_0 : i32, i32
  }
  func.func @transform_3(%arg0: i32) -> (i32, i32) {
    %c0_i32 = arith.constant 0 : i32
    %c0_i32_0 = arith.constant 0 : i32
    return %arg0, %c0_i32 : i32, i32
  }
  func.func @transform_4(%arg0: i32) -> (i32, i32) {
    %c0_i32 = arith.constant 0 : i32
    %c0_i32_0 = arith.constant 0 : i32
    %c0_i32_1 = arith.constant 0 : i32
    return %c0_i32, %c0_i32_0 : i32, i32
  }
  func.func @transform_5(%arg0: i32) -> (i32, i32) {
    %c0_i32 = arith.constant 0 : i32
    %c0_i32_0 = arith.constant 0 : i32
    %c0_i32_1 = arith.constant 0 : i32
    return %c0_i32, %c0_i32_0 : i32, i32
  }
  func.func @transform_6(%arg0: i32) -> (i32, i32) {
    %c0_i32 = arith.constant 0 : i32
    %c0_i32_0 = arith.constant 0 : i32
    return %arg0, %c0_i32 : i32, i32
  }
  func.func @transform_7(%arg0: i32) -> (i32, i32) {
    %c0_i32 = arith.constant 0 : i32
    %c0_i32_0 = arith.constant 0 : i32
    %c0_i32_1 = arith.constant 0 : i32
    return %c0_i32, %c0_i32_0 : i32, i32
  }
  func.func @transform_8(%arg0: i32) -> (i32, i32) {
    %c0_i32 = arith.constant 0 : i32
    %c0_i32_0 = arith.constant 0 : i32
    %c0_i32_1 = arith.constant 0 : i32
    return %c0_i32, %c0_i32_0 : i32, i32
  }
  func.func @transform_9(%arg0: i32) -> (i32, i32) {
    %c0_i32 = arith.constant 0 : i32
    %c0_i32_0 = arith.constant 0 : i32
    %c0_i32_1 = arith.constant 0 : i32
    return %c0_i32, %c0_i32_0 : i32, i32
  }
  func.func @transform_10(%arg0: i32) -> (i32, i32) {
    %c0_i32 = arith.constant 0 : i32
    %c0_i32_0 = arith.constant 0 : i32
    return %c0_i32, %arg0 : i32, i32
  }
}

</mosaic_0001>

<bundles_post_ra>
// kernel: cross_attention.1
= control target key start
LH: loop header
LB: loop body
LE: loop exit
PB: predicated region body
PF: predicated region fallthrough
CT: control target
= control target key end

     0   :  { %16 = vsyncpa [#allocation4], 0  ;;  %s1110_s13 = smov [#allocation3]   ;;  %s1426_s0 = inlined_call_operand.vmem [shape: f32[8,128], index: 0, kind: input, shape index: {}]   ;;  %s1427_s1 = inlined_call_operand.vmem [shape: f32[128,128], index: 1, kind: input, shape index: {}]   ;;  %s1428_s2 = inlined_call_operand.vmem [shape: f32[1,128], index: 2, kind: input, shape index: {}]   ;;  %s1429_s3 = inlined_call_operand.vmem [shape: f32[128,128], index: 3, kind: input, shape index: {}]   ;;  %s1430_s4 = inlined_call_operand.vmem [shape: f32[128,128], index: 4, kind: input, shape index: {}]   ;;  %s1431_s5 = inlined_call_operand.vmem [shape: f32[1,128], index: 5, kind: input, shape index: {}]   ;;  %s1432_s6 = inlined_call_operand.vmem [shape: f32[128,128], index: 6, kind: input, shape index: {}]   ;;  %s1433_s7 = inlined_call_operand.hbm [shape: f32[128,128], index: 7, kind: input, shape index: {}]   ;;  %s1434_s8 = inlined_call_operand.vmem [shape: f32[1,128], index: 8, kind: input, shape index: {}]   ;;  %s1435_s9 = inlined_call_operand.vmem [shape: f32[8,128], index: 9, kind: output, shape index: {0}]   ;;  %s1436_s10 = inlined_call_operand.vmem [shape: f32[8,128], index: 10, kind: output, shape index: {1}]  }
   0x1   :  { %s36_s14 = sshll.u32 %s1110_s13, 4  ;;  %s37_s14 = int_to_ptr.vmem [resolvable:$true] %s36_s14 }
   0x2   :  { %s1096_s15 = scalar_lea.vmem %s37_s14, 2048  ;;  %p1101_p1 = scmp.lt.s32.totalorder %s37_s14, %s37_s14 }
   0x3   :  { %p1097_p0 = scmp.ne.s32.totalorder %s37_s14, %s1096_s15  ;;  %p1102_p2 = scmp.lt.s32.totalorder %s1096_s15, %s1096_s15 }
   0x5   :  { %p1103_p3 = por %p1102_p2, %p1101_p1 }
   0x7   :  { %p1104_p4 = pnand %p1103_p3, %p1097_p0 }
   0x9   :  { %1107 = shalt.err (!%p1104_p4)
}
   0xa   :  { %s1111_s16 = smov 128   ;;  %s1112_s17 = smov 8  }
   0xb   :  { %42 = dma.hbm_to_vmem [thread:$0]  %s1433_s7, 2048, %s37_s14, [#allocation4], %s1111_s16, %s1111_s16, %s1112_s17  }
   0xc   :  { %1108 = dma.done.wait [#allocation4], 2048  }
   0xd   :  { %1109 = vsyncadd [#allocation4], 4294965248  ;;  %v1113_v0 = vmov 0.0   ;;  %vm1114_vm0 = vmmov 0   ;;  %v179_v1 = vld [vmem:[%s1430_s4 + $0x78] sm:$0xff]  ;;  %v178_v2 = vld [vmem:[%s1430_s4 + $0x70] sm:$0xff] }
   0xe   :  { %890 = vmatprep.subr.mxu0 %v1113_v0  ;;  %922 = vmatprep.mubr.msk.f32.mxu0 %vm1114_vm0, %v1113_v0  ;;  %v177_v3 = vld [vmem:[%s1430_s4 + $0x68] sm:$0xff]  ;;  %v176_v4 = vld [vmem:[%s1430_s4 + $0x60] sm:$0xff]  ;;  %v175_v6 = vld [vmem:[%s1430_s4 + $0x58] sm:$0xff] }
   0xf   :  { %925 = vmatprep.subr.mxu1 %v179_v1  ;;  %v148_v5 = vld [vmem:[%s1429_s3] sm:$0xff]  ;;  %v174_v7 = vld [vmem:[%s1430_s4 + $0x50] sm:$0xff]  ;;  %v173_v8 = vld [vmem:[%s1430_s4 + $0x48] sm:$0xff] }
  0x10   :  { %926 = vmatpush3.msra.mxu1 %v179_v1  ;;  %957 = vmatprep.mubr.f32.mxu1 %v148_v5  ;;  %v68_v9 = vld [vmem:[%s1427_s1 + $0x78] sm:$0xff]  ;;  %v67_v10 = vld [vmem:[%s1427_s1 + $0x70] sm:$0xff]  ;;  %v172_v11 = vld [vmem:[%s1430_s4 + $0x40] sm:$0xff] }
  0x11   :  { %927 = vmatprep.subr.mxu1 %v178_v2  ;;  %891 = vmatpush3.msra.mxu0 %v68_v9  ;;  %v66_v12 = vld [vmem:[%s1427_s1 + $0x68] sm:$0xff]  ;;  %v171_v13 = vld [vmem:[%s1430_s4 + $0x38] sm:$0xff]  ;;  %v65_v14 = vld [vmem:[%s1427_s1 + $0x60] sm:$0xff] }
  0x12   :  { %928 = vmatpush3.msra.mxu1 %v178_v2  ;;  %892 = vmatprep.subr.mxu0 %v1113_v0  ;;  %v170_v15 = vld [vmem:[%s1430_s4 + $0x30] sm:$0xff]  ;;  %v64_v16 = vld [vmem:[%s1427_s1 + $0x58] sm:$0xff]  ;;  %v169_v17 = vld [vmem:[%s1430_s4 + $0x28] sm:$0xff] }
  0x13   :  { %929 = vmatprep.subr.mxu1 %v177_v3  ;;  %893 = vmatpush3.msra.mxu0 %v67_v10  ;;  %v63_v18 = vld [vmem:[%s1427_s1 + $0x50] sm:$0xff]  ;;  %v168_v19 = vld [vmem:[%s1430_s4 + $0x20] sm:$0xff]  ;;  %v62_v20 = vld [vmem:[%s1427_s1 + $0x48] sm:$0xff] }
  0x14   :  { %930 = vmatpush3.msra.mxu1 %v177_v3  ;;  %894 = vmatprep.subr.mxu0 %v1113_v0  ;;  %v167_v21 = vld [vmem:[%s1430_s4 + $0x18] sm:$0xff]  ;;  %v61_v22 = vld [vmem:[%s1427_s1 + $0x40] sm:$0xff]  ;;  %v166_v23 = vld [vmem:[%s1430_s4 + $0x10] sm:$0xff] }
  0x15   :  { %931 = vmatprep.subr.mxu1 %v176_v4  ;;  %895 = vmatpush3.msra.mxu0 %v66_v12  ;;  %v60_v24 = vld [vmem:[%s1427_s1 + $0x38] sm:$0xff]  ;;  %v165_v25 = vld [vmem:[%s1430_s4 + $0x8] sm:$0xff]  ;;  %v59_v26 = vld [vmem:[%s1427_s1 + $0x30] sm:$0xff] }
  0x16   :  { %932 = vmatpush3.msra.mxu1 %v176_v4  ;;  %896 = vmatprep.subr.mxu0 %v1113_v0  ;;  %v164_v27 = vld [vmem:[%s1430_s4] sm:$0xff]  ;;  %v58_v28 = vld [vmem:[%s1427_s1 + $0x28] sm:$0xff]  ;;  %v150_v31 = vld [vmem:[%s1429_s3 + $0x10] sm:$0xff] }
  0x17   :  { %933 = vmatprep.subr.mxu1 %v175_v6  ;;  %897 = vmatpush3.msra.mxu0 %v65_v14  ;;  %v149_v29 = vld [vmem:[%s1429_s3 + $0x8] sm:$0xff]  ;;  %v57_v30 = vld [vmem:[%s1427_s1 + $0x20] sm:$0xff]  ;;  %v56_v32 = vld [vmem:[%s1427_s1 + $0x18] sm:$0xff] }
  0x18   :  { %934 = vmatpush3.msra.mxu1 %v175_v6  ;;  %898 = vmatprep.subr.mxu0 %v1113_v0  ;;  %v151_v33 = vld [vmem:[%s1429_s3 + $0x18] sm:$0xff]  ;;  %v55_v34 = vld [vmem:[%s1427_s1 + $0x10] sm:$0xff]  ;;  %v152_v35 = vld [vmem:[%s1429_s3 + $0x20] sm:$0xff] }
  0x19   :  { %935 = vmatprep.subr.mxu1 %v174_v7  ;;  %899 = vmatpush3.msra.mxu0 %v64_v16  ;;  %v54_v36 = vld [vmem:[%s1427_s1 + $0x8] sm:$0xff]  ;;  %v53_v38 = vld [vmem:[%s1427_s1] sm:$0xff]  ;;  %v154_v39 = vld [vmem:[%s1429_s3 + $0x30] sm:$0xff] }
  0x1a   :  { %936 = vmatpush3.msra.mxu1 %v174_v7  ;;  %900 = vmatprep.subr.mxu0 %v1113_v0  ;;  %v153_v37 = vld [vmem:[%s1429_s3 + $0x28] sm:$0xff]  ;;  %v52_v40 = vld [vmem:[%s1426_s0] sm:$0xff]  ;;  %v155_v41 = vld [vmem:[%s1429_s3 + $0x38] sm:$0xff] }
  0x1b   :  { %937 = vmatprep.subr.mxu1 %v173_v8  ;;  %901 = vmatpush3.msra.mxu0 %v63_v18  ;;  %v156_v42 = vld [vmem:[%s1429_s3 + $0x40] sm:$0xff]  ;;  %v157_v43 = vld [vmem:[%s1429_s3 + $0x48] sm:$0xff]  ;;  %v158_v44 = vld [vmem:[%s1429_s3 + $0x50] sm:$0xff] }
  0x1c   :  { %938 = vmatpush3.msra.mxu1 %v173_v8  ;;  %902 = vmatprep.subr.mxu0 %v1113_v0  ;;  %v159_v45 = vld [vmem:[%s1429_s3 + $0x58] sm:$0xff]  ;;  %v160_v46 = vld [vmem:[%s1429_s3 + $0x60] sm:$0xff]  ;;  %v161_v47 = vld [vmem:[%s1429_s3 + $0x68] sm:$0xff] }
  0x1d   :  { %939 = vmatprep.subr.mxu1 %v172_v11  ;;  %903 = vmatpush3.msra.mxu0 %v62_v20  ;;  %v162_v48 = vld [vmem:[%s1429_s3 + $0x70] sm:$0xff]  ;;  %v163_v49 = vld [vmem:[%s1429_s3 + $0x78] sm:$0xff]  ;;  %v361_v52 = vld [vmem:[#allocation3 + $0x68] sm:$0xff] }
  0x1e   :  { %940 = vmatpush3.msra.mxu1 %v172_v11  ;;  %904 = vmatprep.subr.mxu0 %v1113_v0  ;;  %v363_v50 = vld [vmem:[#allocation3 + $0x78] sm:$0xff]  ;;  %v362_v51 = vld [vmem:[#allocation3 + $0x70] sm:$0xff]  ;;  %v360_v53 = vld [vmem:[#allocation3 + $0x60] sm:$0xff] }
  0x1f   :  { %941 = vmatprep.subr.mxu1 %v171_v13  ;;  %905 = vmatpush3.msra.mxu0 %v61_v22  ;;  %v359_v54 = vld [vmem:[#allocation3 + $0x58] sm:$0xff]  ;;  %v358_v55 = vld [vmem:[#allocation3 + $0x50] sm:$0xff]  ;;  %v357_v56 = vld [vmem:[#allocation3 + $0x48] sm:$0xff] }
  0x20   :  { %942 = vmatpush3.msra.mxu1 %v171_v13  ;;  %906 = vmatprep.subr.mxu0 %v1113_v0  ;;  %v356_v57 = vld [vmem:[#allocation3 + $0x40] sm:$0xff]  ;;  %v355_v58 = vld [vmem:[#allocation3 + $0x38] sm:$0xff]  ;;  %v354_v60 = vld [vmem:[#allocation3 + $0x30] sm:$0xff] }
  0x21   :  { %943 = vmatprep.subr.mxu1 %v170_v15  ;;  %907 = vmatpush3.msra.mxu0 %v60_v24  ;;  %v332_v59 = vld [vmem:[%s1432_s6] sm:$0xff]  ;;  %v353_v61 = vld [vmem:[#allocation3 + $0x28] sm:$0xff]  ;;  %v351_v63 = vld [vmem:[#allocation3 + $0x18] sm:$0xff] }
  0x22   :  { %944 = vmatpush3.msra.mxu1 %v170_v15  ;;  %908 = vmatprep.subr.mxu0 %v1113_v0  ;;  %v352_v62 = vld [vmem:[#allocation3 + $0x20] sm:$0xff]  ;;  %v350_v1 = vld [vmem:[#allocation3 + $0x10] sm:$0xff]  ;;  %v349_v2 = vld [vmem:[#allocation3 + $0x8] sm:$0xff] }
  0x23   :  { %945 = vmatprep.subr.mxu1 %v169_v17  ;;  %909 = vmatpush3.msra.mxu0 %v59_v26  ;;  %v348_v3 = vld [vmem:[#allocation3] sm:$0xff]  ;;  %v333_v4 = vld [vmem:[%s1432_s6 + $0x8] sm:$0xff] }
  0x24   :  { %946 = vmatpush3.msra.mxu1 %v169_v17  ;;  %910 = vmatprep.subr.mxu0 %v1113_v0 }
  0x25   :  { %947 = vmatprep.subr.mxu1 %v168_v19  ;;  %911 = vmatpush3.msra.mxu0 %v58_v28 }
  0x26   :  { %948 = vmatpush3.msra.mxu1 %v168_v19  ;;  %912 = vmatprep.subr.mxu0 %v1113_v0 }
  0x27   :  { %949 = vmatprep.subr.mxu1 %v167_v21  ;;  %913 = vmatpush3.msra.mxu0 %v57_v30 }
  0x28   :  { %950 = vmatpush3.msra.mxu1 %v167_v21  ;;  %914 = vmatprep.subr.mxu0 %v1113_v0  ;;  %v787_v21 = vld [vmem:[%s1431_s5] ss:$0 sm:$0xff] }
  0x29   :  { %951 = vmatprep.subr.mxu1 %v166_v23  ;;  %915 = vmatpush3.msra.mxu0 %v56_v32 }
  0x2a   :  { %952 = vmatpush3.msra.mxu1 %v166_v23  ;;  %916 = vmatprep.subr.mxu0 %v1113_v0 }
  0x2b   :  { %953 = vmatprep.subr.mxu1 %v165_v25  ;;  %917 = vmatpush3.msra.mxu0 %v55_v34 }
  0x2c   :  { %954 = vmatpush3.msra.mxu1 %v165_v25  ;;  %918 = vmatprep.subr.mxu0 %v1113_v0 }
  0x2d   :  { %955 = vmatprep.subr.mxu1 %v164_v27  ;;  %919 = vmatpush3.msra.mxu0 %v54_v36 }
  0x2e   :  { %956 = vmatpush3.msra.mxu1 %v164_v27  ;;  %920 = vmatprep.subr.mxu0 %v1113_v0 }
  0x2f   :  { %958 = vmatmul.mubr.f32.vlgmr.msra.gmra.mxu1 %v149_v29  ;;  %1037 = vmatprep.subr.mxu1 %v1113_v0 }
  0x30   :  { %960 = vmatprep.mubr.f32.mxu1 %v150_v31  ;;  %921 = vmatpush3.msra.mxu0 %v53_v38 }
  0x31   :  { %923 = vmatmul.mubr.f32.vlgmr.msra.gmra.mxu0 %v52_v40  ;;  %981 = vmatprep.subr.mxu0 %v363_v50 }
  0x32   :  { %982 = vmatpush3.msra.mxu0 %v363_v50  ;;  %1013 = vmatprep.mubr.f32.mxu0 %v332_v59  ;;  %v346_v59 = vld [vmem:[%s1432_s6 + $0x70] sm:$0xff] }
  0x33   :  { %961 = vmatmul.mubr.f32.gmra.mxu1 %v151_v33  ;;  %983 = vmatprep.subr.mxu0 %v362_v51 }
  0x34   :  { %963 = vmatprep.mubr.f32.mxu1 %v152_v35  ;;  %984 = vmatpush3.msra.mxu0 %v362_v51 }
  0x35   :  { %985 = vmatprep.subr.mxu0 %v361_v52 }
  0x36   :  { %986 = vmatpush3.msra.mxu0 %v361_v52  ;;  %v339_v52 = vld [vmem:[%s1432_s6 + $0x38] sm:$0xff] }
  0x37   :  { %964 = vmatmul.mubr.f32.gmra.mxu1 %v153_v37  ;;  %987 = vmatprep.subr.mxu0 %v360_v53 }
  0x38   :  { %966 = vmatprep.mubr.f32.mxu1 %v154_v39  ;;  %988 = vmatpush3.msra.mxu0 %v360_v53  ;;  %v786_v39 = vld [vmem:[%s1428_s2] ss:$0 sm:$0xff] }
  0x39   :  { %989 = vmatprep.subr.mxu0 %v359_v54  ;;  %v340_v53 = vld [vmem:[%s1432_s6 + $0x40] sm:$0xff] }
  0x3a   :  { %990 = vmatpush3.msra.mxu0 %v359_v54  ;;  %v341_v54 = vld [vmem:[%s1432_s6 + $0x48] sm:$0xff] }
  0x3b   :  { %967 = vmatmul.mubr.f32.gmra.mxu1 %v155_v41  ;;  %991 = vmatprep.subr.mxu0 %v358_v55 }
  0x3c   :  { %969 = vmatprep.mubr.f32.mxu1 %v156_v42  ;;  %992 = vmatpush3.msra.mxu0 %v358_v55  ;;  %v334_v42 = vld [vmem:[%s1432_s6 + $0x10] sm:$0xff] }
  0x3d   :  { %993 = vmatprep.subr.mxu0 %v357_v56  ;;  %v342_v55 = vld [vmem:[%s1432_s6 + $0x50] sm:$0xff] }
  0x3e   :  { %994 = vmatpush3.msra.mxu0 %v357_v56  ;;  %v343_v56 = vld [vmem:[%s1432_s6 + $0x58] sm:$0xff] }
  0x3f   :  { %970 = vmatmul.mubr.f32.gmra.mxu1 %v157_v43  ;;  %995 = vmatprep.subr.mxu0 %v356_v57  ;;  %v335_v43 = vld [vmem:[%s1432_s6 + $0x18] sm:$0xff] }
  0x40   :  { %972 = vmatprep.mubr.f32.mxu1 %v158_v44  ;;  %996 = vmatpush3.msra.mxu0 %v356_v57  ;;  %v336_v44 = vld [vmem:[%s1432_s6 + $0x20] sm:$0xff] }
  0x41   :  { %997 = vmatprep.subr.mxu0 %v355_v58  ;;  %v344_v57 = vld [vmem:[%s1432_s6 + $0x60] sm:$0xff] }
  0x42   :  { %998 = vmatpush3.msra.mxu0 %v355_v58  ;;  %v345_v58 = vld [vmem:[%s1432_s6 + $0x68] sm:$0xff] }
  0x43   :  { %973 = vmatmul.mubr.f32.gmra.mxu1 %v159_v45  ;;  %999 = vmatprep.subr.mxu0 %v354_v60  ;;  %v788_v45 = vld [vmem:[%s1434_s8] ss:$0 sm:$0xff] }
  0x44   :  { %975 = vmatprep.mubr.f32.mxu1 %v160_v46  ;;  %1000 = vmatpush3.msra.mxu0 %v354_v60  ;;  %v337_v46 = vld [vmem:[%s1432_s6 + $0x28] sm:$0xff]  ;;  %v347_v60 = vld [vmem:[%s1432_s6 + $0x78] sm:$0xff] }
  0x45   :  { %1001 = vmatprep.subr.mxu0 %v353_v61 }
  0x46   :  { %1002 = vmatpush3.msra.mxu0 %v353_v61 }
  0x47   :  { %976 = vmatmul.mubr.f32.gmra.mxu1 %v161_v47  ;;  %1003 = vmatprep.subr.mxu0 %v352_v62  ;;  %v338_v47 = vld [vmem:[%s1432_s6 + $0x30] sm:$0xff] }
  0x48   :  { %978 = vmatprep.mubr.f32.mxu1 %v162_v48  ;;  %1004 = vmatpush3.msra.mxu0 %v352_v62 }
  0x49   :  { %1005 = vmatprep.subr.mxu0 %v351_v63 }
  0x4a   :  { %1006 = vmatpush3.msra.mxu0 %v351_v63 }
  0x4b   :  { %979 = vmatmul.mubr.f32.gmra.mxu1 %v163_v49  ;;  %1007 = vmatprep.subr.mxu0 %v350_v1 }
  0x4c   :  { %1069 = vmatprep.mubr.msk.f32.mxu1 %vm1114_vm0, %v1113_v0  ;;  %1008 = vmatpush3.msra.mxu0 %v350_v1 }
  0x4d   :  { %1009 = vmatprep.subr.mxu0 %v349_v2 }
  0x4e   :  { %1010 = vmatpush3.msra.mxu0 %v349_v2 }
  0x4f   :  { %1011 = vmatprep.subr.mxu0 %v348_v3 }
  0x50   :  { %1012 = vmatpush3.msra.mxu0 %v348_v3 }
  0x51   :  { %1014 = vmatmul.mubr.f32.vlgmr.msra.gmra.mxu0 %v333_v4  ;;  %1072 = vmatprep.subr.mxu0 %v1113_v0 }
  0x52   :  { %1016 = vmatprep.mubr.f32.mxu0 %v334_v42 }
  0x55   :  { %1017 = vmatmul.mubr.f32.gmra.mxu0 %v335_v43 }
  0x56   :  { %1019 = vmatprep.mubr.f32.mxu0 %v336_v44 }
  0x59   :  { %1020 = vmatmul.mubr.f32.gmra.mxu0 %v337_v46 }
  0x5a   :  { %1022 = vmatprep.mubr.f32.mxu0 %v338_v47 }
  0x5d   :  { %1023 = vmatmul.mubr.f32.gmra.mxu0 %v339_v52 }
  0x5e   :  { %1025 = vmatprep.mubr.f32.mxu0 %v340_v53 }
  0x61   :  { %1026 = vmatmul.mubr.f32.gmra.mxu0 %v341_v54 }
  0x62   :  { %1028 = vmatprep.mubr.f32.mxu0 %v342_v55 }
  0x65   :  { %1029 = vmatmul.mubr.f32.gmra.mxu0 %v343_v56 }
  0x66   :  { %1031 = vmatprep.mubr.f32.mxu0 %v344_v57 }
  0x69   :  { %1032 = vmatmul.mubr.f32.gmra.mxu0 %v345_v58 }
  0x6a   :  { %1034 = vmatprep.mubr.f32.mxu0 %v346_v59 }
  0x6d   :  { %1035 = vmatmul.mubr.f32.gmra.mxu0 %v347_v60 }
  0x6e   :  { %1076 = vmatprep.mubr.msk.f32.mxu0 %vm1114_vm0, %v1113_v0 }
  0xef   :  { %v959_v5 = vpop.f32.mrf.mxu1 }
  0xf0   :  { %v259_v38 = vadd.f32 %v959_v5, %v787_v21 }
  0xf1   :  { %v1348_v6 = vpop.f32.mrf.mxu1  ;;  %v142_v10 = vpop.f32.mrf.mxu0 }
  0xf2   :  { %v254_v40 = vadd.f32 %v787_v21, %v1348_v6  ;;  %v143_v41 = vadd.f32 %v786_v39, %v142_v10 }
  0xf3   :  { %v962_v7 = vpop.f32.mrf.mxu1  ;;  %v924_v12 = vpop.f32.mrf.mxu0 }
  0xf4   :  { %v269_v36 = vadd.f32 %v962_v7, %v787_v21 }
  0xf5   :  { %v263_v8 = vpop.f32.mrf.mxu1 }
  0xf6   :  { %v264_v37 = vadd.f32 %v787_v21, %v263_v8 }
  0xf7   :  { %v965_v9 = vpop.f32.mrf.mxu1 }
  0xf8   :  { %v279_v34 = vadd.f32 %v965_v9, %v787_v21 }
  0xf9   :  { %v273_v11 = vpop.f32.mrf.mxu1 }
  0xfa   :  { %v274_v35 = vadd.f32 %v787_v21, %v273_v11 }
  0xfb   :  { %v968_v13 = vpop.f32.mrf.mxu1 }
  0xfc   :  { %v289_v32 = vadd.f32 %v968_v13, %v787_v21 }
  0xfd   :  { %v283_v14 = vpop.f32.mrf.mxu1 }
  0xfe   :  { %v284_v33 = vadd.f32 %v787_v21, %v283_v14 }
  0xff   :  { %v971_v15 = vpop.f32.mrf.mxu1 }
 0x100   :  { %v299_v30 = vadd.f32 %v971_v15, %v787_v21 }
 0x101   :  { %v293_v16 = vpop.f32.mrf.mxu1 }
 0x102   :  { %v294_v31 = vadd.f32 %v787_v21, %v293_v16 }
 0x103   :  { %v974_v17 = vpop.f32.mrf.mxu1 }
 0x104   :  { %v309_v28 = vadd.f32 %v974_v17, %v787_v21 }
 0x105   :  { %v303_v18 = vpop.f32.mrf.mxu1 }
 0x106   :  { %v304_v29 = vadd.f32 %v787_v21, %v303_v18 }
 0x107   :  { %v977_v19 = vpop.f32.mrf.mxu1 }
 0x108   :  { %v319_v26 = vadd.f32 %v977_v19, %v787_v21 }
 0x109   :  { %v313_v20 = vpop.f32.mrf.mxu1 }
 0x10a   :  { %v314_v27 = vadd.f32 %v787_v21, %v313_v20 }
 0x10b   :  { %v980_v22 = vpop.f32.mrf.mxu1 }
 0x10c   :  { %v329_v23 = vadd.f32 %v980_v22, %v787_v21 }
 0x10d   :  { %v323_v24 = vpop.f32.mrf.mxu1 }
 0x10e   :  { %1038 = vmatpush3.xpose.msra.mxu1 %v329_v23  ;;  %v324_v25 = vadd.f32 %v787_v21, %v323_v24 }
 0x10f   :  { %1039 = vmatprep.subr.mxu1 %v1113_v0 }
 0x111   :  { %v1015_v48 = vpop.f32.mrf.mxu0 }
 0x112   :  { %1040 = vmatpush3.xpose.msra.mxu1 %v324_v25  ;;  %v443_v49 = vadd.f32 %v1015_v48, %v788_v45 }
 0x113   :  { %1041 = vmatprep.subr.mxu1 %v1113_v0  ;;  %v437_v50 = vpop.f32.mrf.mxu0 }
 0x114   :  { %v438_v51 = vadd.f32 %v788_v45, %v437_v50  ;;  %1073 = vmatpush3.msra.mxu0 %v443_v49 }
 0x115   :  { %1074 = vmatprep.subr.mxu0 %v1113_v0  ;;  %v1018_v16 = vpop.f32.mrf.mxu0 }
 0x116   :  { %1042 = vmatpush3.xpose.msra.mxu1 %v319_v26  ;;  %1075 = vmatpush3.msra.mxu0 %v438_v51 }
 0x117   :  { %1043 = vmatprep.subr.mxu1 %v1113_v0  ;;  %v447_v17 = vpop.f32.mrf.mxu0 }
 0x119   :  { %v1021_v18 = vpop.f32.mrf.mxu0 }
 0x11a   :  { %1044 = vmatpush3.xpose.msra.mxu1 %v314_v27 }
 0x11b   :  { %1045 = vmatprep.subr.mxu1 %v1113_v0  ;;  %v457_v19 = vpop.f32.mrf.mxu0 }
 0x11d   :  { %v1024_v20 = vpop.f32.mrf.mxu0 }
 0x11e   :  { %1046 = vmatpush3.xpose.msra.mxu1 %v309_v28 }
 0x11f   :  { %1047 = vmatprep.subr.mxu1 %v1113_v0  ;;  %v467_v21 = vpop.f32.mrf.mxu0 }
 0x121   :  { %v1027_v22 = vpop.f32.mrf.mxu0 }
 0x122   :  { %1048 = vmatpush3.xpose.msra.mxu1 %v304_v29 }
 0x123   :  { %1049 = vmatprep.subr.mxu1 %v1113_v0  ;;  %v477_v23 = vpop.f32.mrf.mxu0 }
 0x125   :  { %v1030_v24 = vpop.f32.mrf.mxu0 }
 0x126   :  { %1050 = vmatpush3.xpose.msra.mxu1 %v299_v30 }
 0x127   :  { %1051 = vmatprep.subr.mxu1 %v1113_v0  ;;  %v487_v25 = vpop.f32.mrf.mxu0 }
 0x129   :  { %v1033_v26 = vpop.f32.mrf.mxu0 }
 0x12a   :  { %1052 = vmatpush3.xpose.msra.mxu1 %v294_v31 }
 0x12b   :  { %1053 = vmatprep.subr.mxu1 %v1113_v0  ;;  %v497_v27 = vpop.f32.mrf.mxu0 }
 0x12d   :  { %v1036_v28 = vpop.f32.mrf.mxu0 }
 0x12e   :  { %1054 = vmatpush3.xpose.msra.mxu1 %v289_v32 }
 0x12f   :  { %1055 = vmatprep.subr.mxu1 %v1113_v0  ;;  %v507_v29 = vpop.f32.mrf.mxu0 }
 0x132   :  { %1056 = vmatpush3.xpose.msra.mxu1 %v284_v33 }
 0x133   :  { %1057 = vmatprep.subr.mxu1 %v1113_v0 }
 0x136   :  { %1058 = vmatpush3.xpose.msra.mxu1 %v279_v34 }
 0x137   :  { %1059 = vmatprep.subr.mxu1 %v1113_v0 }
 0x13a   :  { %1060 = vmatpush3.xpose.msra.mxu1 %v274_v35 }
 0x13b   :  { %1061 = vmatprep.subr.mxu1 %v1113_v0 }
 0x13e   :  { %1062 = vmatpush3.xpose.msra.mxu1 %v269_v36 }
 0x13f   :  { %1063 = vmatprep.subr.mxu1 %v1113_v0 }
 0x142   :  { %1064 = vmatpush3.xpose.msra.mxu1 %v264_v37 }
 0x143   :  { %1065 = vmatprep.subr.mxu1 %v1113_v0 }
 0x146   :  { %1066 = vmatpush3.xpose.msra.mxu1 %v259_v38 }
 0x147   :  { %1067 = vmatprep.subr.mxu1 %v1113_v0 }
 0x14a   :  { %1068 = vmatpush3.xpose.msra.mxu1 %v254_v40 }
 0x14d   :  { %1070 = vmatmul.mubr.f32.vlgmr.msra.gmra.mxu1 %v143_v41 }
 0x20d   :  { %v682_v61 = vpop.f32.mrf.mxu1 }
 0x20e   :  { %v686_v62 = vrot.slane %v682_v61, 4 }
 0x20f   :  { %v1071_v63 = vpop.f32.mrf.mxu1 }
 0x210   :  { %v687_v1 = vmax.f32 %v682_v61, %v686_v62 }
 0x212   :  { %v688_v2 = vrot.slane %v687_v1, 2 }
 0x214   :  { %v689_v3 = vmax.f32 %v687_v1, %v688_v2 }
 0x216   :  { %v690_v4 = vrot.slane %v689_v3, 1 }
 0x218   :  { %v691_v5 = vmax.f32 %v689_v3, %v690_v4 }
 0x21a   :  { %v692_v6 = vsub.f32 %v682_v61, %v691_v5 }
 0x21c   :  { %v693_v7 = vmul.f32 1.442695, %v692_v6 }
 0x21e   :  { %1084 = vpow2.f32 %v693_v7 }
 0x22b   :  { %v1085_v8 = vpop.eup %1084 }
 0x22c   :  { %v695_v9 = vrot.slane %v1085_v8, 4 }
 0x22e   :  { %v696_v10 = vadd.f32 %v1085_v8, %v695_v9 }
 0x230   :  { %v697_v11 = vrot.slane %v696_v10, 2 }
 0x232   :  { %v698_v12 = vadd.f32 %v697_v11, %v696_v10 }
 0x234   :  { %v699_v13 = vrot.slane %v698_v12, 1 }
 0x236   :  { %v700_v14 = vadd.f32 %v699_v13, %v698_v12 }
 0x238   :  { %1086 = vrcp.f32 %v700_v14 }
 0x245   :  { %v1087_v0 = vpop.eup %1086 }
 0x246   :  { %v702_v15 = vmul.f32 %v1087_v0, %v1085_v8 }
 0x248   :  { %703 = vst [vmem:[%s1436_s10] sm:$0xff] %v702_v15  ;;  %1077 = vmatmul.mubr.f32.vlgmr.msra.gmra.mxu0 %v702_v15 }
 0x308   :  { %v771_v30 = vpop.f32.mrf.mxu0 }
 0x309   :  { %776 = vst [vmem:[%s1435_s9] sm:$0xff] %v771_v30 }
 0x30a   :  { %v1078_v31 = vpop.f32.mrf.mxu0 }
 0x30b   :  { %785 = vsyncpa [#allocation4], 1 }

</bundles_post_ra>
